<compile_context>
chip_gen: v5e
topology: v5e:2x2
jax: 0.10.0
libtpu: 0.0.40
codegen_flags: <defaults>
</compile_context>

<pallas_src>
import functools

import jax
import jax.numpy as jnp
from jax import lax
from jax.experimental import pallas as pl
from jax.experimental.pallas import tpu as pltpu

LANE = 128
_INPUT_BUF_BUDGET = 4 * 1024 * 1024      # target bytes per (single) activation buffer
_MAX_STREAM_CHUNKS = 128                 # cap on unrolled 128-lane chunks per tile
_VMEM_LIMIT_BYTES = 48 * 1024 * 1024     # < v7x's 64 MiB physical VMEM


def _mlp_epilogue(avg, mx, w1, w2, bn_scale, bn_bias):
    """fc(avg) + fc(max) for (Bb, C) pooled rows; avg/max rows batched per matmul."""
    nb = avg.shape[0]
    v = jnp.concatenate([avg, mx], axis=0)                        # (2*Bb, C)
    h = jnp.dot(v, w1, preferred_element_type=jnp.float32)        # (2*Bb, Ch)
    h = jnp.maximum(h * bn_scale + bn_bias, 0.0)                  # BN (eval) + ReLU
    o = jnp.dot(h, w2, preferred_element_type=jnp.float32)        # (2*Bb, C)
    return o[:nb] + o[nb:]


# ----------------------------- Regime A: single spatial tile, batch-blocked ---------

def _single_tile_kernel(x_ref, *rest, hw, fused):
    # x_ref: (Bb, C, HW).  fused: rest = (w1, w2, bn_scale, bn_bias, out)
    #                      else : rest = (avg_out, max_out)
    if fused:
        w1_ref, w2_ref, sc_ref, bi_ref, out_ref = rest
    else:
        avg_ref, max_ref = rest
    x = x_ref[...].astype(jnp.float32)                # (Bb, C, HW)
    avg = jnp.sum(x, axis=-1) * (1.0 / hw)            # (Bb, C)
    mx = jnp.max(x, axis=-1)                          # (Bb, C)
    if fused:
        res = _mlp_epilogue(avg, mx, w1_ref[...], w2_ref[...], sc_ref[...], bi_ref[...])
        out_ref[...] = res[:, None, :]
    else:
        avg_ref[...] = avg[:, None, :]
        max_ref[...] = mx[:, None, :]


# ----------------------------- Regime B: streamed spatial axis ----------------------

def _streaming_kernel(x_ref, *rest, hw_total, hw_tile, n_tiles, fused):
    # x_ref: (1, C, hw_tile).  Scratch accumulators are per-lane (1, C, 128) partials;
    # the single cross-lane reduce happens only in the epilogue.
    if fused:
        w1_ref, w2_ref, sc_ref, bi_ref, out_ref, sum_acc, max_acc = rest
    else:
        avg_ref, max_ref, sum_acc, max_acc = rest

    t = pl.program_id(1)
    last = n_tiles - 1
    n_chunks = hw_tile // LANE

    @pl.when(t == 0)
    def _init():
        sum_acc[...] = jnp.zeros_like(sum_acc)
        max_acc[...] = jnp.full_like(max_acc, -jnp.inf)

    def _accumulate_tile(chunk_plan):
        # chunk_plan: list of (chunk_index, valid_lanes_or_None); fully-invalid chunks
        # of the tail tile are simply absent (static schedule).
        s = sum_acc[...]
        m = max_acc[...]
        for j, valid in chunk_plan:
            chunk = x_ref[:, :, j * LANE:(j + 1) * LANE].astype(jnp.float32)  # (1,C,128)
            if valid is None:                          # steady state: 2 VPU ops / vreg
                s = s + chunk
                m = jnp.maximum(m, chunk)
            else:                                      # boundary chunk of the tail tile
                lane = lax.broadcasted_iota(jnp.int32, chunk.shape, 2)
                keep = lane < valid
                s = s + jnp.where(keep, chunk, 0.0)
                m = jnp.maximum(m, jnp.where(keep, chunk, -jnp.inf))
        sum_acc[...] = s
        max_acc[...] = m

    tail_valid = hw_total - last * hw_tile             # static, in (0, hw_tile]
    full_plan = [(j, None) for j in range(n_chunks)]
    if tail_valid == hw_tile:
        # hw_tile divides HW: every tile is full; no masking anywhere.
        _accumulate_tile(full_plan)
    else:
        tail_plan = [(j, None) for j in range(tail_valid // LANE)]
        if tail_valid % LANE:
            tail_plan.append((tail_valid // LANE, tail_valid % LANE))

        @pl.when(t != last)
        def _full_tiles():
            _accumulate_tile(full_plan)

        @pl.when(t == last)
        def _tail_tile():
            _accumulate_tile(tail_plan)

    @pl.when(t == last)
    def _epilogue():
        avg = jnp.sum(sum_acc[...], axis=-1) * (1.0 / hw_total)   # (1, C) one XLU reduce
        mx = jnp.max(max_acc[...], axis=-1)                       # (1, C)
        if fused:
            res = _mlp_epilogue(avg, mx, w1_ref[...], w2_ref[...],
                                sc_ref[...], bi_ref[...])
            out_ref[...] = res[:, None, :]
        else:
            avg_ref[...] = avg[:, None, :]
            max_ref[...] = mx[:, None, :]


# ----------------------------- Wrapper ----------------------------------------------

def _largest_batch_block(b, slab_bytes, budget):
    best = 1
    for cand in range(1, b + 1):
        if b % cand == 0 and cand * slab_bytes <= budget:
            best = cand
    return best


def global_attention_forward(x_nchw, w1, w2, gamma, beta, running_mean,
                             running_var, eps=1e-5, *, hw_tile=None, fuse_mlp=None):
    """x_nchw: (B, C, H, W).  Returns (B, C, 1, 1) float32 (fc(avg_pool)+fc(max_pool))."""
    B, C, H, W = x_nchw.shape
    HW = H * W
    Ch = w1.shape[1]
    assert w1.shape == (C, Ch) and w2.shape == (Ch, C)

    # Fold eval-mode BatchNorm into per-channel scale / bias.
    bn_scale = (gamma.astype(jnp.float32) /
                jnp.sqrt(running_var.astype(jnp.float32) + eps)).reshape(1, Ch)
    bn_bias = (beta.astype(jnp.float32)
               - running_mean.astype(jnp.float32) * bn_scale[0]).reshape(1, Ch)
    w1f = w1.astype(jnp.float32)
    w2f = w2.astype(jnp.float32)

    # Free reshape of native NCHW -> (B, C, HW); stream in the SOURCE dtype.
    x_k = x_nchw.reshape(B, C, HW)
    elem_bytes = x_k.dtype.itemsize

    if fuse_mlp is None:
        # Keep the tiny MLP fused in-kernel unless the (double-buffered) weights would
        # eat a meaningful slice of VMEM (large C): then hoist it out to one XLA matmul.
        weight_bytes = 2 * (2 * C * Ch + 2 * Ch) * 4
        fuse_mlp = weight_bytes <= (2 * 1024 * 1024)

    slab_bytes = C * HW * elem_bytes
    force_stream = (hw_tile is not None) and (hw_tile < HW)

    if (not force_stream) and slab_bytes <= _INPUT_BUF_BUDGET:
        # ---------------- Regime A: full spatial extent, batch-blocked ----------------
        bb = _largest_batch_block(B, slab_bytes, _INPUT_BUF_BUDGET)
        grid = (B // bb,)
        x_spec = pl.BlockSpec((bb, C, HW), lambda b: (b, 0, 0))
        out_spec = pl.BlockSpec((bb, 1, C), lambda b: (b, 0, 0))
        kernel = functools.partial(_single_tile_kernel, hw=HW, fused=fuse_mlp)
        if fuse_mlp:
            in_specs = [x_spec,
                        pl.BlockSpec((C, Ch), lambda b: (0, 0)),
                        pl.BlockSpec((Ch, C), lambda b: (0, 0)),
                        pl.BlockSpec((1, Ch), lambda b: (0, 0)),
                        pl.BlockSpec((1, Ch), lambda b: (0, 0))]
            operands = (x_k, w1f, w2f, bn_scale, bn_bias)
            out_shape = jax.ShapeDtypeStruct((B, 1, C), jnp.float32)
            out_specs = out_spec
        else:
            in_specs = [x_spec]
            operands = (x_k,)
            out_shape = (jax.ShapeDtypeStruct((B, 1, C), jnp.float32),
                         jax.ShapeDtypeStruct((B, 1, C), jnp.float32))
            out_specs = (out_spec, out_spec)
        scratch = []
        dims = ("parallel",)
    else:
        # ---------------- Regime B: stream the spatial axis in 128-lane tiles ---------
        if hw_tile is None or hw_tile >= HW:
            t_lanes = (_INPUT_BUF_BUDGET // max(C * elem_bytes, 1)) // LANE * LANE
            hw_tile = max(LANE, min(t_lanes, _MAX_STREAM_CHUNKS * LANE))
        assert hw_tile % LANE == 0 and hw_tile >= LANE, \
            "hw_tile must be a multiple of 128"
        n_tiles = pl.cdiv(HW, hw_tile)
        grid = (B, n_tiles)
        x_spec = pl.BlockSpec((1, C, hw_tile), lambda b, t: (b, 0, t))
        out_spec = pl.BlockSpec((1, 1, C), lambda b, t: (b, 0, 0))
        kernel = functools.partial(_streaming_kernel, hw_total=HW, hw_tile=hw_tile,
                                   n_tiles=n_tiles, fused=fuse_mlp)
        if fuse_mlp:
            in_specs = [x_spec,
                        pl.BlockSpec((C, Ch), lambda b, t: (0, 0)),
                        pl.BlockSpec((Ch, C), lambda b, t: (0, 0)),
                        pl.BlockSpec((1, Ch), lambda b, t: (0, 0)),
                        pl.BlockSpec((1, Ch), lambda b, t: (0, 0))]
            operands = (x_k, w1f, w2f, bn_scale, bn_bias)
            out_shape = jax.ShapeDtypeStruct((B, 1, C), jnp.float32)
            out_specs = out_spec
        else:
            in_specs = [x_spec]
            operands = (x_k,)
            out_shape = (jax.ShapeDtypeStruct((B, 1, C), jnp.float32),
                         jax.ShapeDtypeStruct((B, 1, C), jnp.float32))
            out_specs = (out_spec, out_spec)
        scratch = [pltpu.VMEM((1, C, LANE), jnp.float32),    # per-lane running sum
                   pltpu.VMEM((1, C, LANE), jnp.float32)]    # per-lane running max
        dims = ("parallel", "arbitrary")

    result = pl.pallas_call(
        kernel,
        out_shape=out_shape,
        grid_spec=pltpu.PrefetchScalarGridSpec(
            num_scalar_prefetch=0,
            grid=grid,
            in_specs=in_specs,
            out_specs=out_specs,
            scratch_shapes=scratch,
        ),
        compiler_params=pltpu.CompilerParams(
            dimension_semantics=dims,
            vmem_limit_bytes=_VMEM_LIMIT_BYTES),
    )(*operands)

    if fuse_mlp:
        out = result.reshape(B, C)
    else:
        # Hoisted epilogue: one (2B, C) @ (C, Ch) matmul in XLA (negligible FLOPs,
        # keeps the weights out of the streaming kernel's VMEM).
        avg_p = result[0].reshape(B, C)
        max_p = result[1].reshape(B, C)
        v = jnp.concatenate([avg_p, max_p], axis=0)
        h = jnp.maximum((v @ w1f) * bn_scale + bn_bias, 0.0)
        o = h @ w2f
        out = o[:B] + o[B:]
    return out.reshape(B, C, 1, 1)


# ----------------------------- Reference & test harness -----------------------------

def _reference_forward(x_nchw, w1, w2, gamma, beta, running_mean, running_var, eps=1e-5):
    """Pure-JAX reference mirroring the PyTorch forward (eval-mode BN)."""
    avg = jnp.mean(x_nchw.astype(jnp.float32), axis=(2, 3))   # (B, C)
    mxp = jnp.max(x_nchw.astype(jnp.float32), axis=(2, 3))    # (B, C)
    scale = gamma / jnp.sqrt(running_var + eps)
    bias = beta - running_mean * scale

    def fc(v):
        h = v @ w1
        h = h * scale + bias
        h = jnp.maximum(h, 0.0)
        return h @ w2

    out = fc(avg) + fc(mxp)
    B, C = out.shape
    return out.reshape(B, C, 1, 1)


def _make_params(key, C):
    Ch = C // 8
    k1, k2 = jax.random.split(key, 2)
    # PyTorch Conv2d weight (Ch, C, 1, 1) -> w1 = (C, Ch); (C, Ch, 1, 1) -> w2 = (Ch, C).
    w1 = jax.random.normal(k1, (C, Ch), dtype=jnp.float32) * (1.0 / jnp.sqrt(C))
    w2 = jax.random.normal(k2, (Ch, C), dtype=jnp.float32) * (1.0 / jnp.sqrt(Ch))
    gamma = jnp.ones((Ch,), jnp.float32)          # PyTorch BatchNorm2d defaults
    beta = jnp.zeros((Ch,), jnp.float32)
    running_mean = jnp.zeros((Ch,), jnp.float32)
    running_var = jnp.ones((Ch,), jnp.float32)
    return w1, w2, gamma, beta, running_mean, running_var


if __name__ == "__main__":
    key = jax.random.PRNGKey(0)
    kx1, kx2, kp = jax.random.split(key, 3)

    # ---- primary small test: batch-blocked single-tile path (Regime A, fused) ----
    B, C, H, W = 2, 32, 16, 16
    params = _make_params(kp, C)
    x = jax.random.normal(kx1, (B, C, H, W), dtype=jnp.float32)

    out = global_attention_forward(x, *params)
    out = jax.block_until_ready(out)
    ref = _reference_forward(x, *params)
    assert out.shape == (B, C, 1, 1), out.shape
    assert jnp.allclose(out, ref, atol=1e-4, rtol=1e-4), "mismatch (single-tile path)"

    # ---- streaming path with masked tail tile: HW=320 in 128-lane tiles (Regime B) ----
    H2, W2 = 16, 20
    x2 = jax.random.normal(kx2, (B, C, H2, W2), dtype=jnp.float32)
    out2 = global_attention_forward(x2, *params, hw_tile=128)
    out2 = jax.block_until_ready(out2)
    ref2 = _reference_forward(x2, *params)
    assert jnp.allclose(out2, ref2, atol=1e-4, rtol=1e-4), "mismatch (streaming/masked path)"

    # ---- hoisted-MLP path (auto-selected for large C), exercised here at small C ----
    out3 = global_attention_forward(x, *params, fuse_mlp=False)
    out3 = jax.block_until_ready(out3)
    assert jnp.allclose(out3, ref, atol=1e-4, rtol=1e-4), "mismatch (hoisted-MLP path)"

    print("KERNEL_OK")
</pallas_src>

<mosaic_0001>
module attributes {stable_mosaic.version = 11 : i64} {
  func.func @_single_tile_kernel(%arg0: i32, %arg1: memref<2x32x256xf32, #tpu.memory_space<vmem>>, %arg2: memref<32x4xf32, #tpu.memory_space<vmem>>, %arg3: memref<4x32xf32, #tpu.memory_space<vmem>>, %arg4: memref<1x4xf32, #tpu.memory_space<vmem>>, %arg5: memref<1x4xf32, #tpu.memory_space<vmem>>, %arg6: memref<2x1x32xf32, #tpu.memory_space<vmem>>) attributes {dimension_semantics = [#tpu.dimension_semantics<parallel>], iteration_bounds = array<i64: 1>, scalar_prefetch = 0 : i64, scratch_operands = 0 : i64, tpu.core_type = #tpu.core_type<tc>, window_params = [{transform_indices = @transform_0, window_bounds = array<i64: 2, 32, 256>}, {pipeline_mode = #tpu.pipeline_mode<synchronous>, transform_indices = @transform_1, window_bounds = array<i64: 32, 4>}, {pipeline_mode = #tpu.pipeline_mode<synchronous>, transform_indices = @transform_2, window_bounds = array<i64: 4, 32>}, {pipeline_mode = #tpu.pipeline_mode<synchronous>, transform_indices = @transform_3, window_bounds = array<i64: 1, 4>}, {pipeline_mode = #tpu.pipeline_mode<synchronous>, transform_indices = @transform_4, window_bounds = array<i64: 1, 4>}, {transform_indices = @transform_5, window_bounds = array<i64: 2, 1, 32>}]} {
    %c0 = arith.constant 0 : index
    %c0_0 = arith.constant 0 : index
    %c0_1 = arith.constant 0 : index
    %0 = vector.load %arg1[%c0, %c0_0, %c0_1] : memref<2x32x256xf32, #tpu.memory_space<vmem>>, vector<2x32x256xf32>
    %cst = arith.constant dense<0.000000e+00> : vector<2x32xf32>
    %1 = vector.multi_reduction <add>, %0, %cst [2] : vector<2x32x256xf32> to vector<2x32xf32>
    %cst_2 = arith.constant 3.906250e-03 : f32
    %2 = vector.broadcast %cst_2 : f32 to vector<2x32xf32>
    %3 = arith.mulf %1, %2 : vector<2x32xf32>
    %cst_3 = arith.constant dense<0xFF800000> : vector<2x32xf32>
    %4 = vector.multi_reduction <maximumf>, %0, %cst_3 [2] : vector<2x32x256xf32> to vector<2x32xf32>
    %c0_4 = arith.constant 0 : index
    %c0_5 = arith.constant 0 : index
    %5 = vector.load %arg2[%c0_4, %c0_5] : memref<32x4xf32, #tpu.memory_space<vmem>>, vector<32x4xf32>
    %c0_6 = arith.constant 0 : index
    %c0_7 = arith.constant 0 : index
    %6 = vector.load %arg3[%c0_6, %c0_7] : memref<4x32xf32, #tpu.memory_space<vmem>>, vector<4x32xf32>
    %c0_8 = arith.constant 0 : index
    %c0_9 = arith.constant 0 : index
    %7 = vector.load %arg4[%c0_8, %c0_9] : memref<1x4xf32, #tpu.memory_space<vmem>>, vector<1x4xf32>
    %c0_10 = arith.constant 0 : index
    %c0_11 = arith.constant 0 : index
    %8 = vector.load %arg5[%c0_10, %c0_11] : memref<1x4xf32, #tpu.memory_space<vmem>>, vector<1x4xf32>
    %9 = tpu.concatenate %3, %4 in 0 : vector<2x32xf32>, vector<2x32xf32> -> vector<4x32xf32>
    %cst_12 = arith.constant dense<0.000000e+00> : vector<4x4xf32>
    %10 = tpu.matmul %9, %5, %cst_12 {dimension_numbers = #tpu.dot_dimension_numbers<[1], [0], [0], [1], [0, 0, 1, 1], [], []>} : vector<4x32xf32>, vector<32x4xf32>, vector<4x4xf32> -> vector<4x4xf32>
    %11 = vector.broadcast %7 : vector<1x4xf32> to vector<4x4xf32>
    %12 = arith.mulf %10, %11 : vector<4x4xf32>
    %13 = vector.broadcast %8 : vector<1x4xf32> to vector<4x4xf32>
    %14 = arith.addf %12, %13 : vector<4x4xf32>
    %cst_13 = arith.constant 0.000000e+00 : f32
    %15 = vector.broadcast %cst_13 : f32 to vector<4x4xf32>
    %16 = arith.maximumf %14, %15 : vector<4x4xf32>
    %cst_14 = arith.constant dense<0.000000e+00> : vector<4x32xf32>
    %17 = tpu.matmul %16, %6, %cst_14 {dimension_numbers = #tpu.dot_dimension_numbers<[1], [0], [0], [1], [0, 0, 1, 1], [], []>} : vector<4x4xf32>, vector<4x32xf32>, vector<4x32xf32> -> vector<4x32xf32>
    %18 = vector.extract_strided_slice %17 {offsets = [0, 0], sizes = [2, 32], strides = [1, 1]} : vector<4x32xf32> to vector<2x32xf32>
    %19 = vector.extract_strided_slice %17 {offsets = [2, 0], sizes = [2, 32], strides = [1, 1]} : vector<4x32xf32> to vector<2x32xf32>
    %20 = arith.addf %18, %19 : vector<2x32xf32>
    %21 = vector.shape_cast %20 : vector<2x32xf32> to vector<2x1x32xf32>
    %c0_15 = arith.constant 0 : index
    %c0_16 = arith.constant 0 : index
    %c0_17 = arith.constant 0 : index
    %22 = vector.load %arg6[%c0_15, %c0_16, %c0_17] : memref<2x1x32xf32, #tpu.memory_space<vmem>>, vector<2x1x32xf32>
    tpu.vector_store %arg6[%c0_15, %c0_16, %c0_17], %21 {strides = array<i32>} : memref<2x1x32xf32, #tpu.memory_space<vmem>>, vector<2x1x32xf32>,
    return
  }
  func.func @transform_0(%arg0: i32) -> (i32, i32, i32) {
    %c0_i32 = arith.constant 0 : i32
    %c0_i32_0 = arith.constant 0 : i32
    %c0_i32_1 = arith.constant 0 : i32
    return %arg0, %c0_i32, %c0_i32_0 : i32, i32, i32
  }
  func.func @transform_1(%arg0: i32) -> (i32, i32) {
    %c0_i32 = arith.constant 0 : i32
    %c0_i32_0 = arith.constant 0 : i32
    %c0_i32_1 = arith.constant 0 : i32
    return %c0_i32, %c0_i32_0 : i32, i32
  }
  func.func @transform_2(%arg0: i32) -> (i32, i32) {
    %c0_i32 = arith.constant 0 : i32
    %c0_i32_0 = arith.constant 0 : i32
    %c0_i32_1 = arith.constant 0 : i32
    return %c0_i32, %c0_i32_0 : i32, i32
  }
  func.func @transform_3(%arg0: i32) -> (i32, i32) {
    %c0_i32 = arith.constant 0 : i32
    %c0_i32_0 = arith.constant 0 : i32
    %c0_i32_1 = arith.constant 0 : i32
    return %c0_i32, %c0_i32_0 : i32, i32
  }
  func.func @transform_4(%arg0: i32) -> (i32, i32) {
    %c0_i32 = arith.constant 0 : i32
    %c0_i32_0 = arith.constant 0 : i32
    %c0_i32_1 = arith.constant 0 : i32
    return %c0_i32, %c0_i32_0 : i32, i32
  }
  func.func @transform_5(%arg0: i32) -> (i32, i32, i32) {
    %c0_i32 = arith.constant 0 : i32
    %c0_i32_0 = arith.constant 0 : i32
    %c0_i32_1 = arith.constant 0 : i32
    return %arg0, %c0_i32, %c0_i32_0 : i32, i32, i32
  }
}

</mosaic_0001>

<bundles_post_ra>
// kernel: tpu_custom_call.1
= control target key start
LH: loop header
LB: loop body
LE: loop exit
PB: predicated region body
PF: predicated region fallthrough
CT: control target
= control target key end

     0   :  { %10 = vsyncpa [#allocation3], 0  ;;  %s405_s0 = inlined_call_operand.hbm [shape: f32[2,32,256], index: 0, kind: input, shape index: {}]   ;;  %s406_s1 = inlined_call_operand.vmem [shape: f32[32,4], index: 1, kind: input, shape index: {}]   ;;  %s407_s2 = inlined_call_operand.vmem [shape: f32[4,32], index: 2, kind: input, shape index: {}]   ;;  %s408_s3 = inlined_call_operand.vmem [shape: f32[1,4], index: 3, kind: input, shape index: {}]   ;;  %s409_s4 = inlined_call_operand.vmem [shape: f32[1,4], index: 4, kind: input, shape index: {}]   ;;  %s410_s5 = inlined_call_operand.hbm [shape: f32[2,1,32], index: 5, kind: output, shape index: {}]  }
   0x1   :  { %11 = vsyncpa [#allocation4], 0  ;;  %s16_s20 = sshll.u32 %s405_s0, 4  ;;  %s328_s21 = smov [#allocation2]   ;;  %s17_s20 = int_to_ptr.hbm [resolvable:$true] %s16_s20 }
   0x2   :  { %s18_s22 = sshll.u32 %s328_s21, 4  ;;  %s329_s23 = smov 256   ;;  %s19_s22 = int_to_ptr.vmem [resolvable:$true] %s18_s22 }
   0x3   :  { %s330_s24 = smov 16  }
   0x4   :  { %24 = dma.hbm_to_vmem [thread:$0]  %s17_s20, 2048, %s19_s22, [#allocation3], %s329_s23, %s329_s23, %s330_s24  }
   0x5   :  { %324 = dma.done.wait [#allocation3], 2048  }
   0x6   :  { %325 = vsyncadd [#allocation3], 4294965248  ;;  %v45_v0 = vld [vmem:[#allocation2 + $0x40] sm:$0xff]  ;;  %v46_v1 = vld [vmem:[#allocation2 + $0x48] sm:$0xff]  ;;  %v124_v45 = vlaneseq  ;;  %vm129_vm0 = vcmask 130112   ;;  %vm133_vm1 = vcmask 195712  }
   0x7   :  { %v37_v2 = vld [vmem:[#allocation2] sm:$0xff]  ;;  %v65_v3 = vadd.f32 %v46_v1, %v45_v0  ;;  %v38_v4 = vld [vmem:[#allocation2 + $0x8] sm:$0xff]  ;;  %v47_v9 = vld [vmem:[#allocation2 + $0x50] sm:$0xff]  ;;  %v97_v25 = vmax.f32 %v45_v0, %v46_v1  ;;  %vm137_vm2 = vcmask 261312   ;;  %vm146_vm3 = vcmask 1041409   ;;  %s331_s12 = smov [#allocation5]  }
   0x8   :  { %v41_v5 = vld [vmem:[#allocation2 + $0x20] sm:$0xff]  ;;  %v42_v6 = vld [vmem:[#allocation2 + $0x28] sm:$0xff]  ;;  %v53_v7 = vadd.f32 %v38_v4, %v37_v2  ;;  %v48_v10 = vld [vmem:[#allocation2 + $0x58] sm:$0xff]  ;;  %v85_v24 = vmax.f32 %v37_v2, %v38_v4  ;;  %v125_v49 = vand.u32 127, %v124_v45  ;;  %vm171_vm4 = vcmask 1043459   ;;  %s253_s15 = sshll.u32 %s410_s5, 4  ;;  %s254_s15 = int_to_ptr.hbm [resolvable:$true] %s253_s15 }
   0x9   :  { %v59_v8 = vadd.f32 %v42_v6, %v41_v5  ;;  %66 = vadd.xlane.f32.xlu1 %v65_v3  ;;  %v39_v11 = vld [vmem:[#allocation2 + $0x10] sm:$0xff]  ;;  %v40_v12 = vld [vmem:[#allocation2 + $0x18] sm:$0xff]  ;;  %v49_v13 = vld [vmem:[#allocation2 + $0x60] sm:$0xff]  ;;  %v68_v15 = vadd.f32 %v48_v10, %v47_v9  ;;  %v100_v27 = vmax.f32 %v47_v9, %v48_v10  ;;  %v91_v29 = vmax.f32 %v41_v5, %v42_v6 }
   0xa   :  { %54 = vadd.xlane.f32.xlu0 %v53_v7  ;;  %v50_v14 = vld [vmem:[#allocation2 + $0x68] sm:$0xff]  ;;  %v56_v16 = vadd.f32 %v40_v12, %v39_v11  ;;  %v51_v18 = vld [vmem:[#allocation2 + $0x70] sm:$0xff]  ;;  %v52_v19 = vld [vmem:[#allocation2 + $0x78] sm:$0xff]  ;;  %v88_v26 = vmax.f32 %v39_v11, %v40_v12  ;;  %v127_v51 = vadd.s32 4294967288, %v125_v49  ;;  %v131_v55 = vadd.s32 4294967280, %v125_v49 }
   0xb   :  { %60 = vadd.xlane.f32.xlu2 %v59_v8  ;;  %v71_v17 = vadd.f32 %v50_v14, %v49_v13  ;;  %v43_v20 = vld [vmem:[#allocation2 + $0x30] sm:$0xff]  ;;  %v44_v21 = vld [vmem:[#allocation2 + $0x38] sm:$0xff]  ;;  %v74_v22 = vadd.f32 %v52_v19, %v51_v18  ;;  %v103_v28 = vmax.f32 %v49_v13, %v50_v14  ;;  %v106_v31 = vmax.f32 %v51_v18, %v52_v19  ;;  %v110_v40 = vld [vmem:[%s406_s1 + $0x8] sm:$0xff] }
   0xc   :  { %v62_v23 = vadd.f32 %v44_v21, %v43_v20  ;;  %v94_v30 = vmax.f32 %v43_v20, %v44_v21  ;;  %v112_v35 = vld [vmem:[%s406_s1 + $0x18] sm:$0xff]  ;;  %v111_v39 = vld [vmem:[%s406_s1 + $0x10] sm:$0xff]  ;;  %v109_v41 = vld [vmem:[%s406_s1] sm:$0xff]  ;;  %v135_v59 = vadd.s32 4294967272, %v125_v49  ;;  %vm174_vm5 = vcmask 1041408  }
   0xd   :  { %192 = vmatpush.msra.mxu0 %v112_v35  ;;  %vm176_vm6 = vcmask 261120   ;;  %vm213_vm7 = vcmask 1043456   ;;  %vm209_vm8 = vcmask 31744   ;;  %vm244_vm9 = vcmask 253952  }
   0xf   :  { %193 = vmatpush.msra.mxu0 %v111_v39 }
  0x11   :  { %69 = vadd.xlane.f32.xlu1 %v68_v15  ;;  %194 = vmatpush.msra.mxu0 %v110_v40 }
  0x12   :  { %57 = vadd.xlane.f32.xlu0 %v56_v16 }
  0x13   :  { %72 = vadd.xlane.f32.xlu2 %v71_v17  ;;  %195 = vmatpush.msra.mxu0 %v109_v41 }
  0x19   :  { %75 = vadd.xlane.f32.xlu1 %v74_v22 }
  0x1a   :  { %63 = vadd.xlane.f32.xlu0 %v62_v23 }
  0x1b   :  { %86 = vmax.xlane.f32.xlu2 %v85_v24 }
  0x21   :  { %98 = vmax.xlane.f32.xlu1 %v97_v25 }
  0x22   :  { %89 = vmax.xlane.f32.xlu0 %v88_v26 }
  0x23   :  { %101 = vmax.xlane.f32.xlu2 %v100_v27 }
  0x29   :  { %104 = vmax.xlane.f32.xlu1 %v103_v28 }
  0x2a   :  { %92 = vmax.xlane.f32.xlu0 %v91_v29 }
  0x2b   :  { %95 = vmax.xlane.f32.xlu2 %v94_v30 }
  0x32   :  { %107 = vmax.xlane.f32.xlu0 %v106_v31 }
  0x7c   :  { %v67_v32 = vpop.xlane.xlu1 %66 }
  0x7d   :  { %v55_v33 = vpop.xlane.xlu0 %54  ;;  %v81_v50 = vmul.f32 0.00390625, %v67_v32  ;;  %v113_v32 = vld [vmem:[%s407_s2] sm:$0xf]  ;;  %s251_s2 = sshll.u32 %s331_s12, 4  ;;  %s252_s2 = int_to_ptr.vmem [resolvable:$true] %s251_s2 }
  0x7e   :  { %v61_v34 = vpop.xlane.xlu2 %60  ;;  %v77_v54 = vmul.f32 0.00390625, %v55_v33  ;;  %267 = vmatpush.msk.msra.mxu1 %vm213_vm7, %v113_v32  ;;  %v274_v33 = vld [vmem:[%s408_s3] ss:$0 sm:$0xff]  ;;  %s332_s3 = smov 1  }
  0x7f   :  { %v139_v56 = vperm.slane %v81_v50, %v125_v49  ;;  %v79_v57 = vmul.f32 0.00390625, %v61_v34  ;;  %v275_v34 = vld [vmem:[%s409_s4] ss:$0 sm:$0xff] }
  0x80   :  { %v126_v1 = vperm.slane %v77_v54, %v125_v49 }
  0x81   :  { %v132_v7 = vperm.slane %v79_v57, %v131_v55 }
  0x84   :  { %v70_v36 = vpop.xlane.xlu1 %69 }
  0x85   :  { %v58_v37 = vpop.xlane.xlu0 %57  ;;  %v82_v52 = vmul.f32 0.00390625, %v70_v36 }
  0x86   :  { %v73_v38 = vpop.xlane.xlu2 %72  ;;  %v78_v53 = vmul.f32 0.00390625, %v58_v37 }
  0x87   :  { %v83_v58 = vmul.f32 0.00390625, %v73_v38  ;;  %v140_v61 = vperm.slane %v82_v52, %v127_v51 }
  0x88   :  { %v128_v62 = vperm.slane %v78_v53, %v127_v51 }
  0x89   :  { %v142_v8 = vperm.slane %v83_v58, %v131_v55  ;;  %v141_v11 = vsel %vm129_vm0, %v140_v61, %v139_v56 }
  0x8a   :  { %v130_v12 = vsel %vm129_vm0, %v128_v62, %v126_v1 }
  0x8b   :  { %v143_v19 = vsel %vm133_vm1, %v142_v8, %v141_v11  ;;  %v134_v22 = vsel %vm133_vm1, %v132_v7, %v130_v12 }
  0x8c   :  { %v76_v42 = vpop.xlane.xlu1 %75 }
  0x8d   :  { %v64_v43 = vpop.xlane.xlu0 %63  ;;  %v84_v63 = vmul.f32 0.00390625, %v76_v42 }
  0x8e   :  { %v87_v44 = vpop.xlane.xlu2 %86  ;;  %v80_v0 = vmul.f32 0.00390625, %v64_v43 }
  0x8f   :  { %v157_v2 = vperm.slane %v87_v44, %v125_v49  ;;  %v144_v13 = vperm.slane %v84_v63, %v135_v59 }
  0x90   :  { %v136_v14 = vperm.slane %v80_v0, %v135_v59 }
  0x91   :  { %v145_v25 = vsel %vm137_vm2, %v144_v13, %v143_v19 }
  0x92   :  { %v138_v24 = vsel %vm137_vm2, %v136_v14, %v134_v22 }
  0x93   :  { %v147_v29 = vsel %vm146_vm3, %v145_v25, %v138_v24 }
  0x94   :  { %v99_v47 = vpop.xlane.xlu1 %98 }
  0x95   :  { %v90_v46 = vpop.xlane.xlu0 %89  ;;  %v164_v3 = vperm.slane %v99_v47, %v125_v49 }
  0x96   :  { %v102_v48 = vpop.xlane.xlu2 %101  ;;  %v158_v4 = vperm.slane %v90_v46, %v127_v51 }
  0x97   :  { %v165_v5 = vperm.slane %v102_v48, %v127_v51 }
  0x98   :  { %v159_v16 = vsel %vm129_vm0, %v158_v4, %v157_v2 }
  0x99   :  { %v166_v17 = vsel %vm129_vm0, %v165_v5, %v164_v3 }
  0x9c   :  { %v105_v6 = vpop.xlane.xlu1 %104 }
  0x9d   :  { %v93_v60 = vpop.xlane.xlu0 %92  ;;  %v167_v15 = vperm.slane %v105_v6, %v131_v55 }
  0x9e   :  { %v160_v9 = vperm.slane %v93_v60, %v131_v55  ;;  %v96_v10 = vpop.xlane.xlu2 %95 }
  0x9f   :  { %v162_v18 = vperm.slane %v96_v10, %v135_v59  ;;  %v168_v26 = vsel %vm133_vm1, %v167_v15, %v166_v17 }
  0xa0   :  { %v161_v20 = vsel %vm133_vm1, %v160_v9, %v159_v16 }
  0xa1   :  { %v163_v27 = vsel %vm137_vm2, %v162_v18, %v161_v20 }
  0xa5   :  { %v108_v21 = vpop.xlane.xlu0 %107 }
  0xa6   :  { %v169_v23 = vperm.slane %v108_v21, %v135_v59 }
  0xa8   :  { %v170_v28 = vsel %vm137_vm2, %v169_v23, %v168_v26 }
  0xa9   :  { %v172_v30 = vsel %vm171_vm4, %v170_v28, %v163_v27 }
  0xaa   :  { %v175_v31 = vsel %vm174_vm5, %v147_v29, %v172_v30 }
  0xab   :  { %266 = vmatmul.msk.f32.vlgmr.msra.gmra.mxu0 %vm176_vm6, %v175_v31 }
 0x128   :  { %v197_v35 = vpop.f32.mrf.mxu0 }
 0x129   :  { %v203_v36 = vmul.f32 %v274_v33, %v197_v35 }
 0x12b   :  { %v207_v37 = vadd.f32 %v275_v34, %v203_v36 }
 0x12d   :  { %v208_v38 = vmax.f32 %v207_v37, 0.0 }
 0x12f   :  { %268 = vmatmul.msk.f32.vlgmr.msra.gmra.mxu1 %vm209_vm8, %v208_v38 }
 0x1ac   :  { %v234_v39 = vpop.f32.mrf.mxu1 }
 0x1ad   :  { %v238_v40 = vrot.slane %v234_v39, 2 }
 0x1af   :  { %v240_v41 = vadd.f32 %v238_v40, %v234_v39 }
 0x1b1   :  { %v242_v42 = vrot.slane %v240_v41, 1  ;;  %245 = vst.msk [vmem:[#allocation5] sm:$0x1] %vm244_vm9, %v240_v41 }
 0x1b3   :  { %246 = vst.msk [vmem:[#allocation5 + $0x1] sm:$0x1] %vm244_vm9, %v242_v42 }
 0x1b4   :  { %259 = dma.vmem_to_hbm [thread:$0]  %s252_s2, 32, %s254_s15, [#allocation4], %s330_s24, %s330_s24, %s332_s3  }
 0x1b5   :  { %326 = dma.done.wait [#allocation4], 32  }
 0x1b6   :  { %327 = vsyncadd [#allocation4], 4294967264 }
 0x1b7   :  { %264 = vsyncpa [#allocation3], 1 }
 0x1b8   :  { %265 = vsyncpa [#allocation4], 1 }

</bundles_post_ra>
